<compile_context>
chip_gen: v7x
topology: tpu7x:2x2x1
jax: 0.10.0
libtpu: 0.0.40
codegen_flags: <defaults>
</compile_context>

<pallas_src>
import functools

import jax
import jax.numpy as jnp
from jax import lax
from jax.experimental import pallas as pl
from jax.experimental.pallas import tpu as pltpu

LANE = 128


def _round_up(x, m):
    return ((x + m - 1) // m) * m


def _pad2d(a, rows, cols):
    r, c = a.shape
    if r == rows and c == cols:
        return a
    return jnp.pad(a, ((0, rows - r), (0, cols - c)))


# ---------------------------- Pallas kernel ----------------------------

def _make_mlp_kernel(n_layers, compute_dtype):
    """Fused (Linear -> ReLU)* -> Linear over one row tile.

    refs = (x_ref, w1, b1, ..., w_{N-1}, b_{N-1}, wN_T, bN_T, o_ref).
    Hidden feature dims are 128-lane padded by the wrapper; the last layer is
    computed transposed so the output block is (out_p, tm) (lane-dense store).
    Accumulation is always f32.
    """

    def kernel(*refs):
        x_ref = refs[0]
        o_ref = refs[-1]
        # Cast the x tile in VMEM (x stays untouched/unpadded f32 in HBM).
        h = x_ref[...].astype(compute_dtype)

        for li in range(n_layers - 1):
            w_ref = refs[1 + 2 * li]
            b_ref = refs[2 + 2 * li]
            acc = jnp.dot(h, w_ref[...], preferred_element_type=jnp.float32)
            acc = acc + b_ref[...]            # f32 bias add (VPU)
            acc = jnp.maximum(acc, 0.0)       # ReLU in f32
            h = acc.astype(compute_dtype)     # back to MXU dtype

        # Last layer, transposed: (out_p, tm) = W_last^T (out_p, K) . h(tm, K)^T
        wT_ref = refs[1 + 2 * (n_layers - 1)]
        bT_ref = refs[2 + 2 * (n_layers - 1)]
        out_t = lax.dot_general(
            wT_ref[...], h,
            dimension_numbers=(((1,), (1,)), ((), ())),   # contract over K
            preferred_element_type=jnp.float32)
        out_t = out_t + bT_ref[...]           # (out_p, 1) broadcast over lanes
        o_ref[...] = out_t.astype(o_ref.dtype)

    return kernel


# ------------------------------ wrapper ------------------------------

def mlp_forward(x, weights, biases, *, tm=512, compute_dtype=jnp.bfloat16):
    """MLP forward matching the PyTorch module.

    x: (..., in_dim);  weights[i]: (d_i, d_{i+1});  biases[i]: (d_{i+1},)
    Returns (..., out_dim) in float32.
    """
    lead_shape = x.shape[:-1]
    in_dim = x.shape[-1]
    x2 = x.reshape(-1, in_dim)
    M = x2.shape[0]
    n_layers = len(weights)
    out_dim = weights[-1].shape[1]

    dims = [in_dim] + [w.shape[1] for w in weights]
    # Activation width entering each layer: in_dim unpadded, hiddens lane-padded.
    kdims = [in_dim] + [_round_up(d, LANE) for d in dims[1:-1]]
    out_p = _round_up(out_dim, 8)

    # Weights/biases: pad + cast once per call (tiny; zero padding is exact for
    # a ReLU MLP).  Last layer pre-transposed for the lane-dense output store.
    w_b = []
    for li in range(n_layers - 1):
        wp = _pad2d(weights[li], kdims[li], kdims[li + 1]).astype(compute_dtype)
        bp = _pad2d(biases[li].reshape(1, -1), 1, kdims[li + 1]).astype(jnp.float32)
        w_b += [wp, bp]
    w_last_t = _pad2d(weights[-1].T, out_p, kdims[-1]).astype(compute_dtype)
    b_last_t = _pad2d(biases[-1].reshape(-1, 1), out_p, 1).astype(jnp.float32)
    w_b += [w_last_t, b_last_t]

    # Row tiling: single full-extent block for small M (single-TC v5e/v6e),
    # tm-sized lane-aligned tiles otherwise (>=2 parallel steps for v7x).
    tm = max(LANE, _round_up(tm, LANE))
    tm_eff = M if M <= tm else tm
    grid = (pl.cdiv(M, tm_eff),)   # edge block (ragged M) is masked by Pallas

    in_specs = [pl.BlockSpec((tm_eff, in_dim), lambda i: (i, 0))]
    for li in range(n_layers - 1):
        # Resident weights/biases: constant block index -> stay in VMEM.
        in_specs.append(pl.BlockSpec((kdims[li], kdims[li + 1]), lambda i: (0, 0)))
        in_specs.append(pl.BlockSpec((1, kdims[li + 1]), lambda i: (0, 0)))
    in_specs.append(pl.BlockSpec((out_p, kdims[-1]), lambda i: (0, 0)))
    in_specs.append(pl.BlockSpec((out_p, 1), lambda i: (0, 0)))
    out_spec = pl.BlockSpec((out_p, tm_eff), lambda i: (0, i))

    out_t = pl.pallas_call(
        _make_mlp_kernel(n_layers, compute_dtype),
        out_shape=jax.ShapeDtypeStruct((out_p, M), jnp.float32),
        grid_spec=pltpu.PrefetchScalarGridSpec(
            num_scalar_prefetch=0,
            grid=grid,
            in_specs=in_specs,
            out_specs=out_spec,
        ),
        compiler_params=pltpu.CompilerParams(
            dimension_semantics=("parallel",)),
        # TODO(synk): set vmem_limit_bytes / Buffered(1) on resident weights if
        # hidden widths are scaled up (matters on v7x's 64 MiB VMEM).
    )(x2, *w_b)

    out = out_t[:out_dim, :].T            # tiny (out_dim, M) transpose/slice
    return out.reshape(*lead_shape, out_dim)


# --------------------------- pure-JAX reference ---------------------------

def mlp_reference(x, weights, biases):
    lead = x.shape[:-1]
    h = x.reshape(-1, x.shape[-1])
    n = len(weights)
    for li, (w, b) in enumerate(zip(weights, biases)):
        h = jnp.dot(h, w, precision=lax.Precision.HIGHEST) + b
        if li + 1 < n:
            h = jnp.maximum(h, 0.0)
    return h.reshape(*lead, -1)


# ------------------------------ main ------------------------------

if __name__ == "__main__":
    key = jax.random.PRNGKey(0)

    # MLP(in_dim=64, out_dim=3, hidden_list=[32, 32]); x: (2, 512, 64)
    B, Q = 2, 512
    in_dim = 64
    hidden_list = [32, 32]
    out_dim = 3

    dims = [in_dim] + hidden_list + [out_dim]
    n_layers = len(dims) - 1
    ks = jax.random.split(key, 2 * n_layers + 1)

    weights, biases = [], []
    for li in range(n_layers):
        weights.append(
            0.1 * jax.random.normal(ks[2 * li], (dims[li], dims[li + 1]), jnp.float32))
        biases.append(
            0.1 * jax.random.normal(ks[2 * li + 1], (dims[li + 1],), jnp.float32))

    x = jax.random.normal(ks[-1], (B, Q, in_dim), jnp.float32)

    fwd_bf16 = jax.jit(functools.partial(mlp_forward, tm=512,
                                         compute_dtype=jnp.bfloat16))
    fwd_f32 = jax.jit(functools.partial(mlp_forward, tm=512,
                                        compute_dtype=jnp.float32))

    out_bf16 = fwd_bf16(x, weights, biases)
    out_f32 = fwd_f32(x, weights, biases)
    jax.block_until_ready((out_bf16, out_f32))

    ref = mlp_reference(x, weights, biases)

    assert out_bf16.shape == (B, Q, out_dim), out_bf16.shape
    assert out_bf16.dtype == jnp.float32
    assert out_f32.shape == (B, Q, out_dim), out_f32.shape
    assert jnp.allclose(out_f32, ref, rtol=2e-2, atol=2e-2), \
        float(jnp.max(jnp.abs(out_f32 - ref)))
    assert jnp.allclose(out_bf16, ref, rtol=5e-2, atol=5e-2), \
        float(jnp.max(jnp.abs(out_bf16 - ref)))

    print("KERNEL_OK")
</pallas_src>

<mosaic_0001>
module attributes {stable_mosaic.version = 11 : i64} {
  func.func @kernel(%arg0: i32, %arg1: memref<512x64xf32, #tpu.memory_space<vmem>>, %arg2: memref<64x128xbf16, #tpu.memory_space<vmem>>, %arg3: memref<1x128xf32, #tpu.memory_space<vmem>>, %arg4: memref<128x128xbf16, #tpu.memory_space<vmem>>, %arg5: memref<1x128xf32, #tpu.memory_space<vmem>>, %arg6: memref<8x128xbf16, #tpu.memory_space<vmem>>, %arg7: memref<8x1xf32, #tpu.memory_space<vmem>>, %arg8: memref<8x512xf32, #tpu.memory_space<vmem>>) attributes {dimension_semantics = [#tpu.dimension_semantics<parallel>], iteration_bounds = array<i64: 2>, scalar_prefetch = 0 : i64, scratch_operands = 0 : i64, tpu.core_type = #tpu.core_type<tc>, window_params = [{transform_indices = @transform_0, window_bounds = array<i64: 512, 64>}, {pipeline_mode = #tpu.pipeline_mode<synchronous>, transform_indices = @transform_1, window_bounds = array<i64: 64, 128>}, {pipeline_mode = #tpu.pipeline_mode<synchronous>, transform_indices = @transform_2, window_bounds = array<i64: 1, 128>}, {pipeline_mode = #tpu.pipeline_mode<synchronous>, transform_indices = @transform_3, window_bounds = array<i64: 128, 128>}, {pipeline_mode = #tpu.pipeline_mode<synchronous>, transform_indices = @transform_4, window_bounds = array<i64: 1, 128>}, {pipeline_mode = #tpu.pipeline_mode<synchronous>, transform_indices = @transform_5, window_bounds = array<i64: 8, 128>}, {pipeline_mode = #tpu.pipeline_mode<synchronous>, transform_indices = @transform_6, window_bounds = array<i64: 8, 1>}, {transform_indices = @transform_7, window_bounds = array<i64: 8, 512>}]} {
    %c0 = arith.constant 0 : index
    %c0_0 = arith.constant 0 : index
    %0 = vector.load %arg1[%c0, %c0_0] : memref<512x64xf32, #tpu.memory_space<vmem>>, vector<512x64xf32>
    %1 = arith.truncf %0 : vector<512x64xf32> to vector<512x64xbf16>
    %c0_1 = arith.constant 0 : index
    %c0_2 = arith.constant 0 : index
    %2 = vector.load %arg2[%c0_1, %c0_2] : memref<64x128xbf16, #tpu.memory_space<vmem>>, vector<64x128xbf16>
    %cst = arith.constant dense<0.000000e+00> : vector<512x128xf32>
    %3 = tpu.matmul %1, %2, %cst {dimension_numbers = #tpu.dot_dimension_numbers<[1], [0], [0], [1], [0, 0, 1, 1], [], []>} : vector<512x64xbf16>, vector<64x128xbf16>, vector<512x128xf32> -> vector<512x128xf32>
    %c0_3 = arith.constant 0 : index
    %c0_4 = arith.constant 0 : index
    %4 = vector.load %arg3[%c0_3, %c0_4] : memref<1x128xf32, #tpu.memory_space<vmem>>, vector<1x128xf32>
    %5 = vector.broadcast %4 : vector<1x128xf32> to vector<512x128xf32>
    %6 = arith.addf %3, %5 : vector<512x128xf32>
    %cst_5 = arith.constant 0.000000e+00 : f32
    %7 = vector.broadcast %cst_5 : f32 to vector<512x128xf32>
    %8 = arith.maximumf %6, %7 : vector<512x128xf32>
    %9 = arith.truncf %8 : vector<512x128xf32> to vector<512x128xbf16>
    %c0_6 = arith.constant 0 : index
    %c0_7 = arith.constant 0 : index
    %10 = vector.load %arg4[%c0_6, %c0_7] : memref<128x128xbf16, #tpu.memory_space<vmem>>, vector<128x128xbf16>
    %cst_8 = arith.constant dense<0.000000e+00> : vector<512x128xf32>
    %11 = tpu.matmul %9, %10, %cst_8 {dimension_numbers = #tpu.dot_dimension_numbers<[1], [0], [0], [1], [0, 0, 1, 1], [], []>} : vector<512x128xbf16>, vector<128x128xbf16>, vector<512x128xf32> -> vector<512x128xf32>
    %c0_9 = arith.constant 0 : index
    %c0_10 = arith.constant 0 : index
    %12 = vector.load %arg5[%c0_9, %c0_10] : memref<1x128xf32, #tpu.memory_space<vmem>>, vector<1x128xf32>
    %13 = vector.broadcast %12 : vector<1x128xf32> to vector<512x128xf32>
    %14 = arith.addf %11, %13 : vector<512x128xf32>
    %cst_11 = arith.constant 0.000000e+00 : f32
    %15 = vector.broadcast %cst_11 : f32 to vector<512x128xf32>
    %16 = arith.maximumf %14, %15 : vector<512x128xf32>
    %17 = arith.truncf %16 : vector<512x128xf32> to vector<512x128xbf16>
    %c0_12 = arith.constant 0 : index
    %c0_13 = arith.constant 0 : index
    %18 = vector.load %arg6[%c0_12, %c0_13] : memref<8x128xbf16, #tpu.memory_space<vmem>>, vector<8x128xbf16>
    %cst_14 = arith.constant dense<0.000000e+00> : vector<8x512xf32>
    %19 = tpu.matmul %18, %17, %cst_14 {dimension_numbers = #tpu.dot_dimension_numbers<[1], [1], [0], [0], [0, 0, 1, 0], [], []>} : vector<8x128xbf16>, vector<512x128xbf16>, vector<8x512xf32> -> vector<8x512xf32>
    %c0_15 = arith.constant 0 : index
    %c0_16 = arith.constant 0 : index
    %20 = vector.load %arg7[%c0_15, %c0_16] : memref<8x1xf32, #tpu.memory_space<vmem>>, vector<8x1xf32>
    %21 = vector.broadcast %20 : vector<8x1xf32> to vector<8x512xf32>
    %22 = arith.addf %19, %21 : vector<8x512xf32>
    %c0_17 = arith.constant 0 : index
    %c0_18 = arith.constant 0 : index
    %23 = vector.load %arg8[%c0_17, %c0_18] : memref<8x512xf32, #tpu.memory_space<vmem>>, vector<8x512xf32>
    tpu.vector_store %arg8[%c0_17, %c0_18], %22 {strides = array<i32>} : memref<8x512xf32, #tpu.memory_space<vmem>>, vector<8x512xf32>,
    return
  }
  func.func @transform_0(%arg0: i32) -> (i32, i32) {
    %c0_i32 = arith.constant 0 : i32
    %c0_i32_0 = arith.constant 0 : i32
    return %arg0, %c0_i32 : i32, i32
  }
  func.func @transform_1(%arg0: i32) -> (i32, i32) {
    %c0_i32 = arith.constant 0 : i32
    %c0_i32_0 = arith.constant 0 : i32
    %c0_i32_1 = arith.constant 0 : i32
    return %c0_i32, %c0_i32_0 : i32, i32
  }
  func.func @transform_2(%arg0: i32) -> (i32, i32) {
    %c0_i32 = arith.constant 0 : i32
    %c0_i32_0 = arith.constant 0 : i32
    %c0_i32_1 = arith.constant 0 : i32
    return %c0_i32, %c0_i32_0 : i32, i32
  }
  func.func @transform_3(%arg0: i32) -> (i32, i32) {
    %c0_i32 = arith.constant 0 : i32
    %c0_i32_0 = arith.constant 0 : i32
    %c0_i32_1 = arith.constant 0 : i32
    return %c0_i32, %c0_i32_0 : i32, i32
  }
  func.func @transform_4(%arg0: i32) -> (i32, i32) {
    %c0_i32 = arith.constant 0 : i32
    %c0_i32_0 = arith.constant 0 : i32
    %c0_i32_1 = arith.constant 0 : i32
    return %c0_i32, %c0_i32_0 : i32, i32
  }
  func.func @transform_5(%arg0: i32) -> (i32, i32) {
    %c0_i32 = arith.constant 0 : i32
    %c0_i32_0 = arith.constant 0 : i32
    %c0_i32_1 = arith.constant 0 : i32
    return %c0_i32, %c0_i32_0 : i32, i32
  }
  func.func @transform_6(%arg0: i32) -> (i32, i32) {
    %c0_i32 = arith.constant 0 : i32
    %c0_i32_0 = arith.constant 0 : i32
    %c0_i32_1 = arith.constant 0 : i32
    return %c0_i32, %c0_i32_0 : i32, i32
  }
  func.func @transform_7(%arg0: i32) -> (i32, i32) {
    %c0_i32 = arith.constant 0 : i32
    %c0_i32_0 = arith.constant 0 : i32
    return %c0_i32, %arg0 : i32, i32
  }
}

</mosaic_0001>

<bundles_post_ra>
// kernel: mlp_forward.1
= control target key start
LH: loop header
LB: loop body
LE: loop exit
PB: predicated region body
PF: predicated region fallthrough
CT: control target
= control target key end

     0   :  { %s1897_s24 = smov 0   ;;  %s2250_s0 = inlined_call_operand.vmem [shape: f32[1024,64], index: 0, kind: input, shape index: {}]   ;;  %s2251_s1 = inlined_call_operand.vmem [shape: bf16[64,128], index: 1, kind: input, shape index: {}]   ;;  %s2252_s2 = inlined_call_operand.vmem [shape: f32[1,128], index: 2, kind: input, shape index: {}]   ;;  %s2253_s3 = inlined_call_operand.vmem [shape: bf16[128,128], index: 3, kind: input, shape index: {}]   ;;  %s2254_s4 = inlined_call_operand.vmem [shape: f32[1,128], index: 4, kind: input, shape index: {}]   ;;  %s2255_s5 = inlined_call_operand.vmem [shape: bf16[8,128], index: 5, kind: input, shape index: {}]   ;;  %s2256_s6 = inlined_call_operand.vmem [shape: f32[8,1], index: 6, kind: input, shape index: {}]   ;;  %s2257_s7 = inlined_call_operand.vmem [shape: f32[8,1024], index: 7, kind: output, shape index: {}]  }
   0x1 LB: > { %s1505_s25 = sadd.s32 4294967295, %s1854_s24   ;;  %p1509_p0 = scmp.ge.s32.totalorder %s1854_s24, 1  ;;  %s1854_s24 = sphi %s1897_s24, %s17_s24  }
   0x2   : > { %p238_p1 = scmp.lt.s32.totalorder %s1854_s24, 3 }
   0x4   : > { %p239_p2 = pnand %p1509_p0, %p238_p1 }
   0x5   : > { %v1836_v0 = vld [vmem:[%s2251_s1] sm:$0xff] (!%p239_p2)   ;;  %s1510_s28 = sshll.u32 (!%p239_p2), %s1505_s25, 6  ;;  %v1837_v1 = vld [vmem:[%s2251_s1 + $0x8] sm:$0xff] (!%p239_p2)   ;;  %v1838_v2 = vld [vmem:[%s2251_s1 + $0x10] sm:$0xff] (!%p239_p2)   ;;  %vm418_vm0 = vcmask (!%p239_p2), 523264   ;;  %s1512_s19 = sshll.u32 (!%p239_p2), %s1505_s25, 2 }
   0x6   : > { %242 = sbr.rel (%p239_p2) target bundleno = 841 (0x349), region = 48  ;;  %p271_p3 = scmp.lt.s32.totalorder (!%p239_p2), %s1510_s28, 127  ;;  %1674 = vmatprep.subr.bf16.mxu0 (!%p239_p2), %v1836_v0  ;;  %v1839_v5 = vld [vmem:[%s2251_s1 + $0x18] sm:$0xff] (!%p239_p2)   ;;  %v1840_v23 = vld [vmem:[%s2253_s3] sm:$0xff] (!%p239_p2)   ;;  %v1841_v24 = vld [vmem:[%s2253_s3 + $0x8] sm:$0xff] (!%p239_p2)  }
   0x7   : > { %1675 = vmatpush3.bf16.msra.mxu0 (!%p239_p2), %v1836_v0  ;;  %1746 = vmatprep.subr.bf16.mxu1 (!%p239_p2), %v1840_v23  ;;  %v1842_v27 = vld [vmem:[%s2253_s3 + $0x10] sm:$0xff] (!%p239_p2)   ;;  %v1843_v32 = vld [vmem:[%s2253_s3 + $0x18] sm:$0xff] (!%p239_p2)   ;;  %v1844_v35 = vld [vmem:[%s2253_s3 + $0x20] sm:$0xff] (!%p239_p2)   ;;  %p277_p4 = scmp.lt.s32.totalorder (!%p239_p2), %s1512_s19, 7 }
   0x8   : > { %1676 = vmatprep.subr.bf16.mxu0 (!%p239_p2), %v1837_v1  ;;  %1747 = vmatpush3.bf16.msra.mxu1 (!%p239_p2), %v1840_v23  ;;  %v1845_v40 = vld [vmem:[%s2253_s3 + $0x28] sm:$0xff] (!%p239_p2)  }
   0x9   : > { %1748 = vmatprep.subr.bf16.mxu1 (!%p239_p2), %v1841_v24 }
   0xb   : > { %1677 = vmatpush3.bf16.msra.mxu0 (!%p239_p2), %v1837_v1 }
   0xc   : > { %1678 = vmatprep.subr.bf16.mxu0 (!%p239_p2), %v1838_v2  ;;  %1749 = vmatpush3.bf16.msra.mxu1 (!%p239_p2), %v1841_v24 }
   0xd   : > { %s2259_s28 = smov (!%p271_p3, %s1510_s28), 127  ;;  %1750 = vmatprep.subr.bf16.mxu1 %v1842_v27  ;;  %s2261_s19 = smov (!%p277_p4, %s1512_s19), 7 }
   0xe   : > { %s1511_s10 = sshll.u32 %s2259_s28, 3  ;;  %s1513_s20 = sshll.u32 %s2261_s19, 3 }
   0xf   : > { %s1919_s13 = scalar_lea.vmem %s2250_s0, %s1511_s10  ;;  %1679 = vmatpush3.bf16.msra.mxu0 %v1838_v2  ;;  %s280_s23 = scalar_lea.vmem %s2257_s7, %s1513_s20 }
  0x10   : > { %v283_v3 = vld [vmem:[%s1919_s13] sm:$0xff]  ;;  %v284_v4 = vld [vmem:[%s1919_s13 + $0x8] sm:$0xff]  ;;  %v285_v7 = vld [vmem:[%s1919_s13 + $0x10] sm:$0xff]  ;;  %1680 = vmatprep.subr.bf16.mxu0 %v1839_v5  ;;  %1751 = vmatpush3.bf16.msra.mxu1 %v1842_v27 }
  0x11   : > { %v347_v6 = vpack.c.bf16 %v284_v4, %v283_v3  ;;  %v286_v8 = vld [vmem:[%s1919_s13 + $0x18] sm:$0xff]  ;;  %v287_v9 = vld [vmem:[%s1919_s13 + $0x20] sm:$0xff]  ;;  %v288_v10 = vld [vmem:[%s1919_s13 + $0x28] sm:$0xff]  ;;  %1752 = vmatprep.subr.bf16.mxu1 %v1843_v32 }
  0x12   : > { %v348_v11 = vpack.c.bf16 %v286_v8, %v285_v7  ;;  %v349_v12 = vpack.c.bf16 %v288_v10, %v287_v9  ;;  %v289_v13 = vld [vmem:[%s1919_s13 + $0x30] sm:$0xff]  ;;  %v290_v14 = vld [vmem:[%s1919_s13 + $0x38] sm:$0xff]  ;;  %v291_v15 = vld [vmem:[%s1919_s13 + $0x40] sm:$0xff] }
  0x13   : > { %1682 = vmatprep.mubr.msk.bf16.mxu0 %vm418_vm0, %v347_v6  ;;  %1681 = vmatpush3.bf16.msra.mxu0 %v1839_v5  ;;  %v292_v16 = vld [vmem:[%s1919_s13 + $0x48] sm:$0xff]  ;;  %v350_v17 = vpack.c.bf16 %v290_v14, %v289_v13  ;;  %v293_v19 = vld [vmem:[%s1919_s13 + $0x50] sm:$0xff]  ;;  %v294_v20 = vld [vmem:[%s1919_s13 + $0x58] sm:$0xff] }
  0x14   : > { %v351_v18 = vpack.c.bf16 %v292_v16, %v291_v15  ;;  %v295_v21 = vld [vmem:[%s1919_s13 + $0x60] sm:$0xff]  ;;  %v296_v22 = vld [vmem:[%s1919_s13 + $0x68] sm:$0xff]  ;;  %v352_v25 = vpack.c.bf16 %v294_v20, %v293_v19  ;;  %v297_v28 = vld [vmem:[%s1919_s13 + $0x70] sm:$0xff]  ;;  %1753 = vmatpush3.bf16.msra.mxu1 %v1843_v32 }
  0x15   : > { %v353_v26 = vpack.c.bf16 %v296_v22, %v295_v21  ;;  %v298_v29 = vld [vmem:[%s1919_s13 + $0x78] sm:$0xff]  ;;  %v299_v30 = vld [vmem:[%s1919_s13 + $0x80] sm:$0xff]  ;;  %v300_v31 = vld [vmem:[%s1919_s13 + $0x88] sm:$0xff]  ;;  %1754 = vmatprep.subr.bf16.mxu1 %v1844_v35 }
  0x16   : > { %1683 = vmatmul.mubr.msk.bf16.vlgmr.msra.gmra.mrb[0].mxu0 %vm418_vm0, %v348_v11  ;;  %v354_v33 = vpack.c.bf16 %v298_v29, %v297_v28  ;;  %v355_v34 = vpack.c.bf16 %v300_v31, %v299_v30  ;;  %v301_v36 = vld [vmem:[%s1919_s13 + $0x90] sm:$0xff]  ;;  %v302_v37 = vld [vmem:[%s1919_s13 + $0x98] sm:$0xff]  ;;  %v303_v38 = vld [vmem:[%s1919_s13 + $0xa0] sm:$0xff] }
  0x17   : > { %1686 = vmatprep.mubr.msk.bf16.mxu0 %vm418_vm0, %v349_v12  ;;  %v304_v39 = vld [vmem:[%s1919_s13 + $0xa8] sm:$0xff]  ;;  %v356_v41 = vpack.c.bf16 %v302_v37, %v301_v36  ;;  %v305_v43 = vld [vmem:[%s1919_s13 + $0xb0] sm:$0xff]  ;;  %v306_v44 = vld [vmem:[%s1919_s13 + $0xb8] sm:$0xff] }
  0x18   : > { %v357_v42 = vpack.c.bf16 %v304_v39, %v303_v38  ;;  %1755 = vmatpush3.bf16.msra.mxu1 %v1844_v35  ;;  %v307_v45 = vld [vmem:[%s1919_s13 + $0xc0] sm:$0xff]  ;;  %v308_v46 = vld [vmem:[%s1919_s13 + $0xc8] sm:$0xff]  ;;  %v358_v47 = vpack.c.bf16 %v306_v44, %v305_v43  ;;  %v309_v49 = vld [vmem:[%s1919_s13 + $0xd0] sm:$0xff] }
  0x19   : > { %1756 = vmatprep.subr.bf16.mxu1 %v1845_v40  ;;  %v359_v48 = vpack.c.bf16 %v308_v46, %v307_v45  ;;  %v310_v50 = vld [vmem:[%s1919_s13 + $0xd8] sm:$0xff]  ;;  %v311_v51 = vld [vmem:[%s1919_s13 + $0xe0] sm:$0xff]  ;;  %v312_v52 = vld [vmem:[%s1919_s13 + $0xe8] sm:$0xff] }
  0x1a   : > { %v360_v53 = vpack.c.bf16 %v310_v50, %v309_v49  ;;  %v361_v54 = vpack.c.bf16 %v312_v52, %v311_v51  ;;  %v313_v55 = vld [vmem:[%s1919_s13 + $0xf0] sm:$0xff]  ;;  %v314_v56 = vld [vmem:[%s1919_s13 + $0xf8] sm:$0xff]  ;;  %v315_v57 = vld [vmem:[%s1919_s13 + $0x100] sm:$0xff] }
  0x1b   : > { %v316_v58 = vld [vmem:[%s1919_s13 + $0x108] sm:$0xff]  ;;  %v362_v59 = vpack.c.bf16 %v314_v56, %v313_v55  ;;  %v317_v61 = vld [vmem:[%s1919_s13 + $0x110] sm:$0xff]  ;;  %v318_v62 = vld [vmem:[%s1919_s13 + $0x118] sm:$0xff] }
  0x1c   : > { %1757 = vmatpush3.bf16.msra.mxu1 %v1845_v40  ;;  %v363_v60 = vpack.c.bf16 %v316_v58, %v315_v57  ;;  %v319_v63 = vld [vmem:[%s1919_s13 + $0x120] sm:$0xff]  ;;  %v320_v0 = vld [vmem:[%s1919_s13 + $0x128] sm:$0xff]  ;;  %v364_v1 = vpack.c.bf16 %v318_v62, %v317_v61  ;;  %v321_v3 = vld [vmem:[%s1919_s13 + $0x130] sm:$0xff] }
  0x1d   : > { %v365_v2 = vpack.c.bf16 %v320_v0, %v319_v63  ;;  %v322_v4 = vld [vmem:[%s1919_s13 + $0x138] sm:$0xff]  ;;  %v323_v5 = vld [vmem:[%s1919_s13 + $0x140] sm:$0xff]  ;;  %v324_v6 = vld [vmem:[%s1919_s13 + $0x148] sm:$0xff] }
  0x1e   : > { %1687 = vmatmul.mubr.msk.bf16.gmra.mrb[4].mxu0 %vm418_vm0, %v350_v17  ;;  %v366_v7 = vpack.c.bf16 %v322_v4, %v321_v3  ;;  %v367_v8 = vpack.c.bf16 %v324_v6, %v323_v5  ;;  %v325_v9 = vld [vmem:[%s1919_s13 + $0x150] sm:$0xff]  ;;  %v326_v10 = vld [vmem:[%s1919_s13 + $0x158] sm:$0xff]  ;;  %v327_v11 = vld [vmem:[%s1919_s13 + $0x160] sm:$0xff] }
  0x1f   : > { %1690 = vmatprep.mubr.msk.bf16.mxu0 %vm418_vm0, %v351_v18  ;;  %v328_v12 = vld [vmem:[%s1919_s13 + $0x168] sm:$0xff]  ;;  %v368_v13 = vpack.c.bf16 %v326_v10, %v325_v9  ;;  %v329_v15 = vld [vmem:[%s1919_s13 + $0x170] sm:$0xff]  ;;  %v330_v16 = vld [vmem:[%s1919_s13 + $0x178] sm:$0xff] }
  0x20   : > { %v369_v14 = vpack.c.bf16 %v328_v12, %v327_v11  ;;  %v331_v17 = vld [vmem:[%s1919_s13 + $0x180] sm:$0xff]  ;;  %v332_v18 = vld [vmem:[%s1919_s13 + $0x188] sm:$0xff]  ;;  %v370_v19 = vpack.c.bf16 %v330_v16, %v329_v15  ;;  %v1846_v20 = vld [vmem:[%s2253_s3 + $0x30] sm:$0xff]  }
  0x21   : > { %v371_v21 = vpack.c.bf16 %v332_v18, %v331_v17  ;;  %1758 = vmatprep.subr.bf16.mxu1 %v1846_v20  ;;  %v1847_v22 = vld [vmem:[%s2253_s3 + $0x38] sm:$0xff]   ;;  %v333_v23 = vld [vmem:[%s1919_s13 + $0x190] sm:$0xff]  ;;  %v339_v31 = vld [vmem:[%s1919_s13 + $0x1c0] sm:$0xff] }
  0x22   : > { %1759 = vmatpush3.bf16.msra.mxu1 %v1846_v20  ;;  %v334_v24 = vld [vmem:[%s1919_s13 + $0x198] sm:$0xff]  ;;  %v337_v29 = vld [vmem:[%s1919_s13 + $0x1b0] sm:$0xff]  ;;  %v340_v32 = vld [vmem:[%s1919_s13 + $0x1c8] sm:$0xff] }
  0x23   : > { %1760 = vmatprep.subr.bf16.mxu1 %v1847_v22  ;;  %v372_v27 = vpack.c.bf16 %v334_v24, %v333_v23  ;;  %v338_v30 = vld [vmem:[%s1919_s13 + $0x1b8] sm:$0xff]  ;;  %v341_v35 = vld [vmem:[%s1919_s13 + $0x1d0] sm:$0xff]  ;;  %v343_v37 = vld [vmem:[%s1919_s13 + $0x1e0] sm:$0xff] }
  0x24   : > { %v342_v36 = vld [vmem:[%s1919_s13 + $0x1d8] sm:$0xff]  ;;  %v344_v38 = vld [vmem:[%s1919_s13 + $0x1e8] sm:$0xff]  ;;  %v2047_v44 = vld [vmem:[%s2252_s2] ss:$0 sm:$0xff] }
  0x25   : > { %v376_v39 = vpack.c.bf16 %v342_v36, %v341_v35  ;;  %v377_v40 = vpack.c.bf16 %v344_v38, %v343_v37 }
  0x26   : > { %1691 = vmatmul.mubr.msk.bf16.gmra.mrb[8].mxu0 %vm418_vm0, %v352_v25  ;;  %v335_v25 = vld [vmem:[%s1919_s13 + $0x1a0] sm:$0xff]  ;;  %1761 = vmatpush3.bf16.msra.mxu1 %v1847_v22 }
  0x27   : > { %1694 = vmatprep.mubr.msk.bf16.mxu0 %vm418_vm0, %v353_v26  ;;  %v336_v26 = vld [vmem:[%s1919_s13 + $0x1a8] sm:$0xff] }
  0x28   : > { %v373_v28 = vpack.c.bf16 %v336_v26, %v335_v25 }
  0x2e   : > { %1695 = vmatmul.mubr.msk.bf16.gmra.mrb[12].mxu0 %vm418_vm0, %v354_v33  ;;  %v374_v33 = vpack.c.bf16 %v338_v30, %v337_v29 }
  0x2f   : > { %1698 = vmatprep.mubr.msk.bf16.mxu0 %vm418_vm0, %v355_v34  ;;  %v375_v34 = vpack.c.bf16 %v340_v32, %v339_v31 }
  0x36   : > { %1699 = vmatmul.mubr.msk.bf16.gmra.mrb[16].mxu0 %vm418_vm0, %v356_v41  ;;  %v345_v41 = vld [vmem:[%s1919_s13 + $0x1f0] sm:$0xff] }
  0x37   : > { %1702 = vmatprep.mubr.msk.bf16.mxu0 %vm418_vm0, %v357_v42  ;;  %v346_v42 = vld [vmem:[%s1919_s13 + $0x1f8] sm:$0xff] }
  0x38   : > { %v378_v43 = vpack.c.bf16 %v346_v42, %v345_v41 }
  0x3e   : > { %1703 = vmatmul.mubr.msk.bf16.gmra.mrb[20].mxu0 %vm418_vm0, %v358_v47 }
  0x3f   : > { %1706 = vmatprep.mubr.msk.bf16.mxu0 %vm418_vm0, %v359_v48 }
  0x46   : > { %1707 = vmatmul.mubr.msk.bf16.gmra.mrb[24].mxu0 %vm418_vm0, %v360_v53 }
  0x47   : > { %1710 = vmatprep.mubr.msk.bf16.mxu0 %vm418_vm0, %v361_v54 }
  0x4e   : > { %1711 = vmatmul.mubr.msk.bf16.gmra.mrb[28].mxu0 %vm418_vm0, %v362_v59 }
  0x4f   : > { %1714 = vmatprep.mubr.msk.bf16.mxu0 %vm418_vm0, %v363_v60 }
  0x56   : > { %1715 = vmatmul.mubr.msk.bf16.gmra.mrb[32].mxu0 %vm418_vm0, %v364_v1 }
  0x57   : > { %1718 = vmatprep.mubr.msk.bf16.mxu0 %vm418_vm0, %v365_v2 }
  0x5e   : > { %1719 = vmatmul.mubr.msk.bf16.gmra.mrb[36].mxu0 %vm418_vm0, %v366_v7 }
  0x5f   : > { %1722 = vmatprep.mubr.msk.bf16.mxu0 %vm418_vm0, %v367_v8 }
  0x66   : > { %1723 = vmatmul.mubr.msk.bf16.gmra.mrb[40].mxu0 %vm418_vm0, %v368_v13 }
  0x67   : > { %1726 = vmatprep.mubr.msk.bf16.mxu0 %vm418_vm0, %v369_v14 }
  0x6e   : > { %1727 = vmatmul.mubr.msk.bf16.gmra.mrb[44].mxu0 %vm418_vm0, %v370_v19 }
  0x6f   : > { %1730 = vmatprep.mubr.msk.bf16.mxu0 %vm418_vm0, %v371_v21 }
  0x76   : > { %1731 = vmatmul.mubr.msk.bf16.gmra.mrb[48].mxu0 %vm418_vm0, %v372_v27 }
  0x77   : > { %1734 = vmatprep.mubr.msk.bf16.mxu0 %vm418_vm0, %v373_v28 }
  0x7e   : > { %1735 = vmatmul.mubr.msk.bf16.gmra.mrb[52].mxu0 %vm418_vm0, %v374_v33 }
  0x7f   : > { %1738 = vmatprep.mubr.msk.bf16.mxu0 %vm418_vm0, %v375_v34 }
  0x86   : > { %1739 = vmatmul.mubr.msk.bf16.gmra.mrb[56].mxu0 %vm418_vm0, %v376_v39 }
  0x87   : > { %1742 = vmatprep.mubr.msk.bf16.mxu0 %vm418_vm0, %v377_v40 }
  0x8e   : > { %1743 = vmatmul.mubr.msk.bf16.gmra.mrb[60].mxu0 %vm418_vm0, %v378_v43 }
  0xe9   : > { %v1684_v45 = vpop.f32.mrb[0].mxu0 }
  0xea   : > { %v558_v46 = vadd.f32 %v1684_v45, %v2047_v44  ;;  %v549_v47 = vpop.f32.mrb[1].mxu0 }
  0xeb   : > { %v550_v48 = vadd.f32 %v2047_v44, %v549_v47  ;;  %v1685_v49 = vpop.f32.mrb[2].mxu0 }
  0xec   : > { %v561_v50 = vadd.f32 %v1685_v49, %v2047_v44  ;;  %v552_v51 = vpop.f32.mrb[3].mxu0  ;;  %v806_v53 = vmax.f32 %v558_v46, 0.0 }
  0xed   : > { %v553_v52 = vadd.f32 %v2047_v44, %v552_v51  ;;  %v804_v55 = vmax.f32 %v550_v48, 0.0 }
  0xee   : > { %v807_v54 = vmax.f32 %v561_v50, 0.0 }
  0xef   : > { %v805_v56 = vmax.f32 %v553_v52, 0.0 }
  0xf0   : > { %v869_v57 = vpack.c.bf16 %v807_v54, %v806_v53 }
  0xf1   : > { %v1688_v58 = vpop.f32.mrb[4].mxu0  ;;  %v868_v59 = vpack.c.bf16 %v805_v56, %v804_v55 }
  0xf2   : > { %v574_v60 = vadd.f32 %v1688_v58, %v2047_v44  ;;  %v565_v61 = vpop.f32.mrb[5].mxu0 }
  0xf3   : > { %v566_v62 = vadd.f32 %v2047_v44, %v565_v61  ;;  %v1689_v63 = vpop.f32.mrb[6].mxu0  ;;  %1762 = vmatprep.mubr.bf16.mxu1 %v868_v59 }
  0xf4   : > { %v577_v0 = vadd.f32 %v1689_v63, %v2047_v44  ;;  %v568_v1 = vpop.f32.mrb[7].mxu0  ;;  %1763 = vmatmul.mubr.bf16.vlgmr.msra.gmra.mrb[0].mxu1 %v869_v57  ;;  %v810_v3 = vmax.f32 %v574_v60, 0.0 }
  0xf5   : > { %v569_v2 = vadd.f32 %v2047_v44, %v568_v1  ;;  %v808_v5 = vmax.f32 %v566_v62, 0.0 }
  0xf6   : > { %v811_v4 = vmax.f32 %v577_v0, 0.0 }
  0xf7   : > { %v809_v6 = vmax.f32 %v569_v2, 0.0 }
  0xf8   : > { %v871_v7 = vpack.c.bf16 %v811_v4, %v810_v3 }
  0xf9   : > { %v870_v8 = vpack.c.bf16 %v809_v6, %v808_v5  ;;  %v1692_v9 = vpop.f32.mrb[8].mxu0 }
  0xfa   : > { %v590_v10 = vadd.f32 %v1692_v9, %v2047_v44  ;;  %v581_v11 = vpop.f32.mrb[9].mxu0 }
  0xfb   : > { %v582_v12 = vadd.f32 %v2047_v44, %v581_v11  ;;  %v1693_v13 = vpop.f32.mrb[10].mxu0  ;;  %1766 = vmatprep.mubr.bf16.mxu1 %v870_v8 }
  0xfc   : > { %v593_v14 = vadd.f32 %v1693_v13, %v2047_v44  ;;  %v584_v15 = vpop.f32.mrb[11].mxu0  ;;  %1767 = vmatmul.mubr.bf16.gmra.mrb[4].mxu1 %v871_v7  ;;  %v814_v17 = vmax.f32 %v590_v10, 0.0 }
  0xfd   : > { %v585_v16 = vadd.f32 %v2047_v44, %v584_v15  ;;  %v812_v19 = vmax.f32 %v582_v12, 0.0 }
  0xfe   : > { %v815_v18 = vmax.f32 %v593_v14, 0.0 }
  0xff   : > { %v813_v20 = vmax.f32 %v585_v16, 0.0 }
 0x100   : > { %v873_v21 = vpack.c.bf16 %v815_v18, %v814_v17 }
 0x101   : > { %v872_v22 = vpack.c.bf16 %v813_v20, %v812_v19  ;;  %v1696_v23 = vpop.f32.mrb[12].mxu0 }
 0x102   : > { %v606_v24 = vadd.f32 %v1696_v23, %v2047_v44  ;;  %v597_v25 = vpop.f32.mrb[13].mxu0 }
 0x103   : > { %v598_v26 = vadd.f32 %v2047_v44, %v597_v25  ;;  %v1697_v27 = vpop.f32.mrb[14].mxu0  ;;  %1770 = vmatprep.mubr.bf16.mxu1 %v872_v22 }
 0x104   : > { %v609_v28 = vadd.f32 %v1697_v27, %v2047_v44  ;;  %v600_v29 = vpop.f32.mrb[15].mxu0  ;;  %1771 = vmatmul.mubr.bf16.gmra.mrb[8].mxu1 %v873_v21  ;;  %v818_v31 = vmax.f32 %v606_v24, 0.0 }
 0x105   : > { %v601_v30 = vadd.f32 %v2047_v44, %v600_v29  ;;  %v816_v33 = vmax.f32 %v598_v26, 0.0 }
 0x106   : > { %v819_v32 = vmax.f32 %v609_v28, 0.0 }
 0x107   : > { %v817_v34 = vmax.f32 %v601_v30, 0.0 }
 0x108   : > { %v875_v35 = vpack.c.bf16 %v819_v32, %v818_v31 }
 0x109   : > { %v874_v36 = vpack.c.bf16 %v817_v34, %v816_v33  ;;  %v1700_v37 = vpop.f32.mrb[16].mxu0 }
 0x10a   : > { %v622_v38 = vadd.f32 %v1700_v37, %v2047_v44  ;;  %v613_v39 = vpop.f32.mrb[17].mxu0 }
 0x10b   : > { %v614_v40 = vadd.f32 %v2047_v44, %v613_v39  ;;  %v1701_v41 = vpop.f32.mrb[18].mxu0  ;;  %1774 = vmatprep.mubr.bf16.mxu1 %v874_v36 }
 0x10c   : > { %v625_v42 = vadd.f32 %v1701_v41, %v2047_v44  ;;  %v616_v43 = vpop.f32.mrb[19].mxu0  ;;  %1775 = vmatmul.mubr.bf16.gmra.mrb[12].mxu1 %v875_v35  ;;  %v822_v46 = vmax.f32 %v622_v38, 0.0 }
 0x10d   : > { %v617_v45 = vadd.f32 %v2047_v44, %v616_v43  ;;  %v820_v48 = vmax.f32 %v614_v40, 0.0 }
 0x10e   : > { %v823_v47 = vmax.f32 %v625_v42, 0.0 }
 0x10f   : > { %v821_v49 = vmax.f32 %v617_v45, 0.0 }
 0x110   : > { %v877_v50 = vpack.c.bf16 %v823_v47, %v822_v46 }
 0x111   : > { %v876_v51 = vpack.c.bf16 %v821_v49, %v820_v48  ;;  %v1704_v52 = vpop.f32.mrb[20].mxu0 }
 0x112   : > { %v638_v53 = vadd.f32 %v1704_v52, %v2047_v44  ;;  %v629_v54 = vpop.f32.mrb[21].mxu0 }
 0x113   : > { %v630_v55 = vadd.f32 %v2047_v44, %v629_v54  ;;  %v1705_v56 = vpop.f32.mrb[22].mxu0  ;;  %1778 = vmatprep.mubr.bf16.mxu1 %v876_v51 }
 0x114   : > { %v641_v57 = vadd.f32 %v1705_v56, %v2047_v44  ;;  %v632_v58 = vpop.f32.mrb[23].mxu0  ;;  %1779 = vmatmul.mubr.bf16.gmra.mrb[16].mxu1 %v877_v50  ;;  %v826_v60 = vmax.f32 %v638_v53, 0.0 }
 0x115   : > { %v633_v59 = vadd.f32 %v2047_v44, %v632_v58  ;;  %v824_v62 = vmax.f32 %v630_v55, 0.0 }
 0x116   : > { %v827_v61 = vmax.f32 %v641_v57, 0.0 }
 0x117   : > { %v825_v63 = vmax.f32 %v633_v59, 0.0 }
 0x118   : > { %v879_v0 = vpack.c.bf16 %v827_v61, %v826_v60 }
 0x119   : > { %v878_v1 = vpack.c.bf16 %v825_v63, %v824_v62  ;;  %v1708_v2 = vpop.f32.mrb[24].mxu0 }
 0x11a   : > { %v654_v3 = vadd.f32 %v1708_v2, %v2047_v44  ;;  %v645_v4 = vpop.f32.mrb[25].mxu0 }
 0x11b   : > { %v646_v5 = vadd.f32 %v2047_v44, %v645_v4  ;;  %v1709_v6 = vpop.f32.mrb[26].mxu0  ;;  %1782 = vmatprep.mubr.bf16.mxu1 %v878_v1 }
 0x11c   : > { %v657_v7 = vadd.f32 %v1709_v6, %v2047_v44  ;;  %v648_v8 = vpop.f32.mrb[27].mxu0  ;;  %1783 = vmatmul.mubr.bf16.gmra.mrb[20].mxu1 %v879_v0  ;;  %v830_v10 = vmax.f32 %v654_v3, 0.0 }
 0x11d   : > { %v649_v9 = vadd.f32 %v2047_v44, %v648_v8  ;;  %v828_v12 = vmax.f32 %v646_v5, 0.0 }
 0x11e   : > { %v831_v11 = vmax.f32 %v657_v7, 0.0 }
 0x11f   : > { %v829_v13 = vmax.f32 %v649_v9, 0.0 }
 0x120   : > { %v881_v14 = vpack.c.bf16 %v831_v11, %v830_v10 }
 0x121   : > { %v880_v15 = vpack.c.bf16 %v829_v13, %v828_v12  ;;  %v1712_v16 = vpop.f32.mrb[28].mxu0 }
 0x122   : > { %v670_v17 = vadd.f32 %v1712_v16, %v2047_v44  ;;  %v661_v18 = vpop.f32.mrb[29].mxu0 }
 0x123   : > { %v662_v19 = vadd.f32 %v2047_v44, %v661_v18  ;;  %v1713_v20 = vpop.f32.mrb[30].mxu0  ;;  %1786 = vmatprep.mubr.bf16.mxu1 %v880_v15 }
 0x124   : > { %v673_v21 = vadd.f32 %v1713_v20, %v2047_v44  ;;  %v664_v22 = vpop.f32.mrb[31].mxu0  ;;  %1787 = vmatmul.mubr.bf16.gmra.mrb[24].mxu1 %v881_v14  ;;  %v834_v24 = vmax.f32 %v670_v17, 0.0 }
 0x125   : > { %v665_v23 = vadd.f32 %v2047_v44, %v664_v22  ;;  %v832_v26 = vmax.f32 %v662_v19, 0.0 }
 0x126   : > { %v835_v25 = vmax.f32 %v673_v21, 0.0 }
 0x127   : > { %v833_v27 = vmax.f32 %v665_v23, 0.0 }
 0x128   : > { %v883_v28 = vpack.c.bf16 %v835_v25, %v834_v24 }
 0x129   : > { %v882_v29 = vpack.c.bf16 %v833_v27, %v832_v26  ;;  %v1716_v30 = vpop.f32.mrb[32].mxu0 }
 0x12a   : > { %v686_v31 = vadd.f32 %v1716_v30, %v2047_v44  ;;  %v677_v32 = vpop.f32.mrb[33].mxu0 }
 0x12b   : > { %v678_v33 = vadd.f32 %v2047_v44, %v677_v32  ;;  %v1717_v34 = vpop.f32.mrb[34].mxu0  ;;  %1790 = vmatprep.mubr.bf16.mxu1 %v882_v29 }
 0x12c   : > { %v689_v35 = vadd.f32 %v1717_v34, %v2047_v44  ;;  %v680_v36 = vpop.f32.mrb[35].mxu0  ;;  %1791 = vmatmul.mubr.bf16.gmra.mrb[28].mxu1 %v883_v28  ;;  %v838_v38 = vmax.f32 %v686_v31, 0.0 }
 0x12d   : > { %v681_v37 = vadd.f32 %v2047_v44, %v680_v36  ;;  %v836_v40 = vmax.f32 %v678_v33, 0.0 }
 0x12e   : > { %v839_v39 = vmax.f32 %v689_v35, 0.0 }
 0x12f   : > { %v837_v41 = vmax.f32 %v681_v37, 0.0 }
 0x130   : > { %v885_v42 = vpack.c.bf16 %v839_v39, %v838_v38 }
 0x131   : > { %v884_v43 = vpack.c.bf16 %v837_v41, %v836_v40  ;;  %v1720_v45 = vpop.f32.mrb[36].mxu0 }
 0x132   : > { %v702_v46 = vadd.f32 %v1720_v45, %v2047_v44  ;;  %v693_v47 = vpop.f32.mrb[37].mxu0 }
 0x133   : > { %v694_v48 = vadd.f32 %v2047_v44, %v693_v47  ;;  %v1721_v49 = vpop.f32.mrb[38].mxu0  ;;  %1794 = vmatprep.mubr.bf16.mxu1 %v884_v43 }
 0x134   : > { %v705_v50 = vadd.f32 %v1721_v49, %v2047_v44  ;;  %v696_v51 = vpop.f32.mrb[39].mxu0  ;;  %1795 = vmatmul.mubr.bf16.gmra.mrb[32].mxu1 %v885_v42  ;;  %v842_v53 = vmax.f32 %v702_v46, 0.0 }
 0x135   : > { %v697_v52 = vadd.f32 %v2047_v44, %v696_v51  ;;  %v840_v55 = vmax.f32 %v694_v48, 0.0 }
 0x136   : > { %v843_v54 = vmax.f32 %v705_v50, 0.0 }
 0x137   : > { %v841_v56 = vmax.f32 %v697_v52, 0.0 }
 0x138   : > { %v887_v57 = vpack.c.bf16 %v843_v54, %v842_v53 }
 0x139   : > { %v886_v58 = vpack.c.bf16 %v841_v56, %v840_v55  ;;  %v1724_v59 = vpop.f32.mrb[40].mxu0 }
 0x13a   : > { %v718_v60 = vadd.f32 %v1724_v59, %v2047_v44  ;;  %v709_v61 = vpop.f32.mrb[41].mxu0 }
 0x13b   : > { %v710_v62 = vadd.f32 %v2047_v44, %v709_v61  ;;  %v1725_v63 = vpop.f32.mrb[42].mxu0  ;;  %1798 = vmatprep.mubr.bf16.mxu1 %v886_v58 }
 0x13c   : > { %v721_v0 = vadd.f32 %v1725_v63, %v2047_v44  ;;  %v712_v1 = vpop.f32.mrb[43].mxu0  ;;  %1799 = vmatmul.mubr.bf16.gmra.mrb[36].mxu1 %v887_v57  ;;  %v846_v3 = vmax.f32 %v718_v60, 0.0 }
 0x13d   : > { %v713_v2 = vadd.f32 %v2047_v44, %v712_v1  ;;  %v844_v5 = vmax.f32 %v710_v62, 0.0 }
 0x13e   : > { %v847_v4 = vmax.f32 %v721_v0, 0.0 }
 0x13f   : > { %v845_v6 = vmax.f32 %v713_v2, 0.0 }
 0x140   : > { %v889_v7 = vpack.c.bf16 %v847_v4, %v846_v3 }
 0x141   : > { %v888_v8 = vpack.c.bf16 %v845_v6, %v844_v5  ;;  %v1728_v9 = vpop.f32.mrb[44].mxu0 }
 0x142   : > { %v734_v10 = vadd.f32 %v1728_v9, %v2047_v44  ;;  %v725_v11 = vpop.f32.mrb[45].mxu0 }
 0x143   : > { %v726_v12 = vadd.f32 %v2047_v44, %v725_v11  ;;  %v1729_v13 = vpop.f32.mrb[46].mxu0  ;;  %1802 = vmatprep.mubr.bf16.mxu1 %v888_v8 }
 0x144   : > { %v737_v14 = vadd.f32 %v1729_v13, %v2047_v44  ;;  %v728_v15 = vpop.f32.mrb[47].mxu0  ;;  %1803 = vmatmul.mubr.bf16.gmra.mrb[40].mxu1 %v889_v7  ;;  %v850_v17 = vmax.f32 %v734_v10, 0.0 }
 0x145   : > { %v729_v16 = vadd.f32 %v2047_v44, %v728_v15  ;;  %v848_v19 = vmax.f32 %v726_v12, 0.0 }
 0x146   : > { %v851_v18 = vmax.f32 %v737_v14, 0.0 }
 0x147   : > { %v849_v20 = vmax.f32 %v729_v16, 0.0  ;;  %v2116_v16 = vld [vmem:[%s2254_s4] ss:$0 sm:$0xff] }
 0x148   : > { %v891_v21 = vpack.c.bf16 %v851_v18, %v850_v17 }
 0x149   : > { %v890_v22 = vpack.c.bf16 %v849_v20, %v848_v19  ;;  %v1732_v23 = vpop.f32.mrb[48].mxu0 }
 0x14a   : > { %v750_v24 = vadd.f32 %v1732_v23, %v2047_v44  ;;  %v741_v25 = vpop.f32.mrb[49].mxu0 }
 0x14b   : > { %v742_v26 = vadd.f32 %v2047_v44, %v741_v25  ;;  %v1733_v27 = vpop.f32.mrb[50].mxu0  ;;  %1806 = vmatprep.mubr.bf16.mxu1 %v890_v22 }
 0x14c   : > { %v753_v28 = vadd.f32 %v1733_v27, %v2047_v44  ;;  %v744_v29 = vpop.f32.mrb[51].mxu0  ;;  %1807 = vmatmul.mubr.bf16.gmra.mrb[44].mxu1 %v891_v21  ;;  %v854_v31 = vmax.f32 %v750_v24, 0.0 }
 0x14d   : > { %v745_v30 = vadd.f32 %v2047_v44, %v744_v29  ;;  %v852_v33 = vmax.f32 %v742_v26, 0.0 }
 0x14e   : > { %v855_v32 = vmax.f32 %v753_v28, 0.0 }
 0x14f   : > { %v853_v34 = vmax.f32 %v745_v30, 0.0 }
 0x150   : > { %v893_v35 = vpack.c.bf16 %v855_v32, %v854_v31 }
 0x151   : > { %v892_v36 = vpack.c.bf16 %v853_v34, %v852_v33  ;;  %v1736_v37 = vpop.f32.mrb[52].mxu0 }
 0x152   : > { %v766_v38 = vadd.f32 %v1736_v37, %v2047_v44  ;;  %v757_v39 = vpop.f32.mrb[53].mxu0 }
 0x153   : > { %1810 = vmatprep.mubr.bf16.mxu1 %v892_v36  ;;  %v758_v40 = vadd.f32 %v2047_v44, %v757_v39  ;;  %v1737_v41 = vpop.f32.mrb[54].mxu0 }
 0x154   : > { %1811 = vmatmul.mubr.bf16.gmra.mrb[48].mxu1 %v893_v35  ;;  %v858_v42 = vmax.f32 %v766_v38, 0.0  ;;  %v769_v43 = vadd.f32 %v1737_v41, %v2047_v44  ;;  %v760_v45 = vpop.f32.mrb[55].mxu0 }
 0x155   : > { %v856_v46 = vmax.f32 %v758_v40, 0.0  ;;  %v761_v47 = vadd.f32 %v2047_v44, %v760_v45 }
 0x156   : > { %v859_v48 = vmax.f32 %v769_v43, 0.0 }
 0x157   : > { %v857_v49 = vmax.f32 %v761_v47, 0.0 }
 0x158   : > { %v895_v50 = vpack.c.bf16 %v859_v48, %v858_v42 }
 0x159   : > { %v894_v51 = vpack.c.bf16 %v857_v49, %v856_v46  ;;  %v1740_v52 = vpop.f32.mrb[56].mxu0 }
 0x15a   : > { %v782_v53 = vadd.f32 %v1740_v52, %v2047_v44  ;;  %v773_v54 = vpop.f32.mrb[57].mxu0 }
 0x15b   : > { %1814 = vmatprep.mubr.bf16.mxu1 %v894_v51  ;;  %v774_v55 = vadd.f32 %v2047_v44, %v773_v54  ;;  %v1741_v56 = vpop.f32.mrb[58].mxu0 }
 0x15c   : > { %1815 = vmatmul.mubr.bf16.gmra.mrb[52].mxu1 %v895_v50  ;;  %v862_v57 = vmax.f32 %v782_v53, 0.0  ;;  %v785_v58 = vadd.f32 %v1741_v56, %v2047_v44  ;;  %v776_v59 = vpop.f32.mrb[59].mxu0 }
 0x15d   : > { %v860_v60 = vmax.f32 %v774_v55, 0.0  ;;  %v777_v61 = vadd.f32 %v2047_v44, %v776_v59 }
 0x15e   : > { %v863_v62 = vmax.f32 %v785_v58, 0.0 }
 0x15f   : > { %v861_v63 = vmax.f32 %v777_v61, 0.0 }
 0x160   : > { %v897_v0 = vpack.c.bf16 %v863_v62, %v862_v57 }
 0x161   : > { %v896_v1 = vpack.c.bf16 %v861_v63, %v860_v60  ;;  %v1744_v2 = vpop.f32.mrb[60].mxu0 }
 0x162   : > { %v798_v3 = vadd.f32 %v1744_v2, %v2047_v44  ;;  %v789_v4 = vpop.f32.mrb[61].mxu0 }
 0x163   : > { %1818 = vmatprep.mubr.bf16.mxu1 %v896_v1  ;;  %v790_v5 = vadd.f32 %v2047_v44, %v789_v4  ;;  %v1745_v6 = vpop.f32.mrb[62].mxu0 }
 0x164   : > { %1819 = vmatmul.mubr.bf16.gmra.mrb[56].mxu1 %v897_v0  ;;  %v866_v7 = vmax.f32 %v798_v3, 0.0  ;;  %v801_v8 = vadd.f32 %v1745_v6, %v2047_v44  ;;  %v792_v9 = vpop.f32.mrb[63].mxu0 }
 0x165   : > { %v864_v10 = vmax.f32 %v790_v5, 0.0  ;;  %v793_v11 = vadd.f32 %v2047_v44, %v792_v9 }
 0x166   : > { %v867_v12 = vmax.f32 %v801_v8, 0.0 }
 0x167   : > { %v865_v13 = vmax.f32 %v793_v11, 0.0 }
 0x168   : > { %v899_v14 = vpack.c.bf16 %v867_v12, %v866_v7 }
 0x169   : > { %v898_v15 = vpack.c.bf16 %v865_v13, %v864_v10 }
 0x16b   : > { %1822 = vmatprep.mubr.bf16.mxu1 %v898_v15 }
 0x16c   : > { %1823 = vmatmul.mubr.bf16.gmra.mrb[60].mxu1 %v899_v14 }
 0x1c7   : > { %v1764_v17 = vpop.f32.mrb[0].mxu1 }
 0x1c8   : > { %v1014_v18 = vadd.f32 %v1764_v17, %v2116_v16  ;;  %v1005_v19 = vpop.f32.mrb[1].mxu1  ;;  %v2156_v17 = vld [vmem:[%s2255_s5] sm:$0xf] }
 0x1c9   : > { %v1006_v20 = vadd.f32 %v2116_v16, %v1005_v19  ;;  %v1765_v21 = vpop.f32.mrb[2].mxu1  ;;  %1654 = vmatprep.mubr.bf16.mxu0 %v2156_v17  ;;  %1672 = vmatprep.mubr.bf16.mxu1 %v2156_v17 }
 0x1ca   : > { %v1017_v44 = vadd.f32 %v1765_v21, %v2116_v16  ;;  %v1008_v22 = vpop.f32.mrb[3].mxu1  ;;  %v1262_v24 = vmax.f32 %v1014_v18, 0.0 }
 0x1cb   : > { %v1009_v23 = vadd.f32 %v2116_v16, %v1008_v22  ;;  %v1260_v26 = vmax.f32 %v1006_v20, 0.0 }
 0x1cc   : > { %v1263_v25 = vmax.f32 %v1017_v44, 0.0 }
 0x1cd   : > { %v1261_v27 = vmax.f32 %v1009_v23, 0.0 }
 0x1ce   : > { %v2122_v28 = vpack.c.bf16 %v1263_v25, %v1262_v24 }
 0x1cf   : > { %v2124_v29 = vpack.c.bf16 %v1261_v27, %v1260_v26  ;;  %v1768_v30 = vpop.f32.mrb[4].mxu1 }
 0x1d0   : > { %v1030_v31 = vadd.f32 %v1768_v30, %v2116_v16  ;;  %v1021_v32 = vpop.f32.mrb[5].mxu1 }
 0x1d1   : > { %v1022_v33 = vadd.f32 %v2116_v16, %v1021_v32  ;;  %v1769_v34 = vpop.f32.mrb[6].mxu1 }
 0x1d2   : > { %v1033_v35 = vadd.f32 %v1769_v34, %v2116_v16  ;;  %v1024_v36 = vpop.f32.mrb[7].mxu1  ;;  %v1266_v38 = vmax.f32 %v1030_v31, 0.0  ;;  %v1357_v31 = vld [vmem:[%s2256_s6] sm:$0xff]  ;;  %v1856_v34 = vmov 0  }
 0x1d3   : > { %v1025_v37 = vadd.f32 %v2116_v16, %v1024_v36  ;;  %v1264_v40 = vmax.f32 %v1022_v33, 0.0  ;;  %1835 = vset.pattern.permute.xlu0 %v1856_v34 }
 0x1d4   : > { %v1267_v39 = vmax.f32 %v1033_v35, 0.0  ;;  %1360 = vperm.xlu0 %1835, %v1357_v31  }
 0x1d5   : > { %v1265_v41 = vmax.f32 %v1025_v37, 0.0 }
 0x1d6   : > { %v2130_v42 = vpack.c.bf16 %v1267_v39, %v1266_v38 }
 0x1d7   : > { %v2132_v43 = vpack.c.bf16 %v1265_v41, %v1264_v40  ;;  %v1772_v45 = vpop.f32.mrb[8].mxu1 }
 0x1d8   : > { %v1046_v46 = vadd.f32 %v1772_v45, %v2116_v16  ;;  %v1037_v47 = vpop.f32.mrb[9].mxu1 }
 0x1d9   : > { %v1038_v48 = vadd.f32 %v2116_v16, %v1037_v47  ;;  %v1773_v49 = vpop.f32.mrb[10].mxu1 }
 0x1da   : > { %v1049_v50 = vadd.f32 %v1773_v49, %v2116_v16  ;;  %v1040_v51 = vpop.f32.mrb[11].mxu1  ;;  %v1270_v53 = vmax.f32 %v1046_v46, 0.0 }
 0x1db   : > { %v1041_v52 = vadd.f32 %v2116_v16, %v1040_v51  ;;  %v1268_v55 = vmax.f32 %v1038_v48, 0.0 }
 0x1dc   : > { %v1271_v54 = vmax.f32 %v1049_v50, 0.0 }
 0x1dd   : > { %v1269_v56 = vmax.f32 %v1041_v52, 0.0 }
 0x1de   : > { %v2138_v57 = vpack.c.bf16 %v1271_v54, %v1270_v53 }
 0x1df   : > { %v2140_v58 = vpack.c.bf16 %v1269_v56, %v1268_v55  ;;  %v1776_v59 = vpop.f32.mrb[12].mxu1 }
 0x1e0   : > { %v1062_v60 = vadd.f32 %v1776_v59, %v2116_v16  ;;  %v1053_v61 = vpop.f32.mrb[13].mxu1 }
 0x1e1   : > { %v1054_v62 = vadd.f32 %v2116_v16, %v1053_v61  ;;  %v1777_v63 = vpop.f32.mrb[14].mxu1 }
 0x1e2   : > { %v1065_v0 = vadd.f32 %v1777_v63, %v2116_v16  ;;  %v1056_v1 = vpop.f32.mrb[15].mxu1  ;;  %v1274_v3 = vmax.f32 %v1062_v60, 0.0 }
 0x1e3   : > { %v1057_v2 = vadd.f32 %v2116_v16, %v1056_v1  ;;  %v1272_v5 = vmax.f32 %v1054_v62, 0.0 }
 0x1e4   : > { %v1275_v4 = vmax.f32 %v1065_v0, 0.0 }
 0x1e5   : > { %v1273_v6 = vmax.f32 %v1057_v2, 0.0 }
 0x1e6   : > { %v2146_v7 = vpack.c.bf16 %v1275_v4, %v1274_v3 }
 0x1e7   : > { %v2148_v8 = vpack.c.bf16 %v1273_v6, %v1272_v5  ;;  %v1780_v9 = vpop.f32.mrb[16].mxu1 }
 0x1e8   : > { %v1078_v10 = vadd.f32 %v1780_v9, %v2116_v16  ;;  %v1069_v11 = vpop.f32.mrb[17].mxu1 }
 0x1e9   : > { %v1070_v12 = vadd.f32 %v2116_v16, %v1069_v11  ;;  %v1781_v13 = vpop.f32.mrb[18].mxu1 }
 0x1ea   : > { %v1081_v14 = vadd.f32 %v1781_v13, %v2116_v16  ;;  %v1072_v15 = vpop.f32.mrb[19].mxu1  ;;  %v1278_v19 = vmax.f32 %v1078_v10, 0.0 }
 0x1eb   : > { %v1073_v18 = vadd.f32 %v2116_v16, %v1072_v15  ;;  %v1276_v21 = vmax.f32 %v1070_v12, 0.0 }
 0x1ec   : > { %v1279_v20 = vmax.f32 %v1081_v14, 0.0 }
 0x1ed   : > { %v1277_v44 = vmax.f32 %v1073_v18, 0.0 }
 0x1ee   : > { %v1333_v22 = vpack.c.bf16 %v1279_v20, %v1278_v19 }
 0x1ef   : > { %v1332_v23 = vpack.c.bf16 %v1277_v44, %v1276_v21  ;;  %v1784_v24 = vpop.f32.mrb[20].mxu1 }
 0x1f0   : > { %v1094_v25 = vadd.f32 %v1784_v24, %v2116_v16  ;;  %v1085_v26 = vpop.f32.mrb[21].mxu1 }
 0x1f1   : > { %v1086_v27 = vadd.f32 %v2116_v16, %v1085_v26  ;;  %v1785_v30 = vpop.f32.mrb[22].mxu1  ;;  %1638 = vmatprep.subr.bf16.mxu0 %v1332_v23 }
 0x1f2   : > { %v1097_v32 = vadd.f32 %v1785_v30, %v2116_v16  ;;  %v1088_v33 = vpop.f32.mrb[23].mxu1  ;;  %1639 = vmatpush3.bf16.xpose.msra.mxu0 %v2124_v29  ;;  %v1282_v36 = vmax.f32 %v1094_v25, 0.0 }
 0x1f3   : > { %v1089_v35 = vadd.f32 %v2116_v16, %v1088_v33  ;;  %1640 = vmatprep.subr.bf16.mxu0 %v1333_v22  ;;  %v1280_v38 = vmax.f32 %v1086_v27, 0.0 }
 0x1f4   : > { %v1283_v37 = vmax.f32 %v1097_v32, 0.0 }
 0x1f5   : > { %v1281_v39 = vmax.f32 %v1089_v35, 0.0 }
 0x1f6   : > { %v1335_v40 = vpack.c.bf16 %v1283_v37, %v1282_v36 }
 0x1f7   : > { %v1334_v41 = vpack.c.bf16 %v1281_v39, %v1280_v38  ;;  %v1788_v45 = vpop.f32.mrb[24].mxu1 }
 0x1f8   : > { %v1110_v46 = vadd.f32 %v1788_v45, %v2116_v16  ;;  %v1101_v47 = vpop.f32.mrb[25].mxu1 }
 0x1f9   : > { %v1102_v48 = vadd.f32 %v2116_v16, %v1101_v47  ;;  %v1789_v49 = vpop.f32.mrb[26].mxu1 }
 0x1fa   : > { %v1113_v29 = vadd.f32 %v1789_v49, %v2116_v16  ;;  %v1104_v50 = vpop.f32.mrb[27].mxu1  ;;  %1641 = vmatpush3.bf16.xpose.msra.mxu0 %v2122_v28  ;;  %v1286_v52 = vmax.f32 %v1110_v46, 0.0 }
 0x1fb   : > { %v1105_v51 = vadd.f32 %v2116_v16, %v1104_v50  ;;  %1642 = vmatprep.subr.bf16.mxu0 %v1334_v41  ;;  %v1284_v54 = vmax.f32 %v1102_v48, 0.0 }
 0x1fc   : > { %v1287_v53 = vmax.f32 %v1113_v29, 0.0 }
 0x1fd   : > { %v1285_v55 = vmax.f32 %v1105_v51, 0.0 }
 0x1fe   : > { %v1337_v56 = vpack.c.bf16 %v1287_v53, %v1286_v52 }
 0x1ff   : > { %v1336_v59 = vpack.c.bf16 %v1285_v55, %v1284_v54  ;;  %v1792_v60 = vpop.f32.mrb[28].mxu1 }
 0x200   : > { %v1126_v61 = vadd.f32 %v1792_v60, %v2116_v16  ;;  %v1117_v62 = vpop.f32.mrb[29].mxu1 }
 0x201   : > { %v1118_v63 = vadd.f32 %v2116_v16, %v1117_v62  ;;  %v1793_v0 = vpop.f32.mrb[30].mxu1 }
 0x202   : > { %v1129_v1 = vadd.f32 %v1793_v0, %v2116_v16  ;;  %v1120_v2 = vpop.f32.mrb[31].mxu1  ;;  %1643 = vmatpush3.bf16.xpose.msra.mxu0 %v2132_v43  ;;  %v1290_v3 = vmax.f32 %v1126_v61, 0.0 }
 0x203   : > { %v1121_v28 = vadd.f32 %v2116_v16, %v1120_v2  ;;  %1644 = vmatprep.subr.bf16.mxu0 %v1335_v40  ;;  %v1288_v5 = vmax.f32 %v1118_v63, 0.0 }
 0x204   : > { %v1291_v4 = vmax.f32 %v1129_v1, 0.0 }
 0x205   : > { %v1289_v6 = vmax.f32 %v1121_v28, 0.0 }
 0x206   : > { %v1339_v9 = vpack.c.bf16 %v1291_v4, %v1290_v3 }
 0x207   : > { %v1338_v10 = vpack.c.bf16 %v1289_v6, %v1288_v5  ;;  %v1796_v11 = vpop.f32.mrb[32].mxu1 }
 0x208   : > { %v1142_v12 = vadd.f32 %v1796_v11, %v2116_v16  ;;  %v1133_v13 = vpop.f32.mrb[33].mxu1 }
 0x209   : > { %v1134_v14 = vadd.f32 %v2116_v16, %v1133_v13  ;;  %v1797_v15 = vpop.f32.mrb[34].mxu1 }
 0x20a   : > { %v1145_v18 = vadd.f32 %v1797_v15, %v2116_v16  ;;  %v1136_v19 = vpop.f32.mrb[35].mxu1  ;;  %1645 = vmatpush3.bf16.xpose.msra.mxu0 %v2130_v42  ;;  %v1294_v20 = vmax.f32 %v1142_v12, 0.0 }
 0x20b   : > { %v1137_v43 = vadd.f32 %v2116_v16, %v1136_v19  ;;  %1646 = vmatprep.subr.bf16.mxu0 %v1336_v59  ;;  %v1292_v44 = vmax.f32 %v1134_v14, 0.0 }
 0x20c   : > { %v1295_v21 = vmax.f32 %v1145_v18, 0.0 }
 0x20d   : > { %v1293_v22 = vmax.f32 %v1137_v43, 0.0 }
 0x20e   : > { %v2184_v23 = vpack.c.bf16 %v1295_v21, %v1294_v20 }
 0x20f   : > { %v2186_v24 = vpack.c.bf16 %v1293_v22, %v1292_v44  ;;  %v1800_v25 = vpop.f32.mrb[36].mxu1 }
 0x210   : > { %v1158_v26 = vadd.f32 %v1800_v25, %v2116_v16  ;;  %v1149_v27 = vpop.f32.mrb[37].mxu1 }
 0x211   : > { %v1150_v30 = vadd.f32 %v2116_v16, %v1149_v27  ;;  %v1801_v31 = vpop.f32.mrb[38].mxu1 }
 0x212   : > { %v1161_v42 = vadd.f32 %v1801_v31, %v2116_v16  ;;  %v1152_v32 = vpop.f32.mrb[39].mxu1  ;;  %1647 = vmatpush3.bf16.xpose.msra.mxu0 %v2140_v58  ;;  %v1298_v34 = vmax.f32 %v1158_v26, 0.0 }
 0x213   : > { %v1153_v33 = vadd.f32 %v2116_v16, %v1152_v32  ;;  %1648 = vmatprep.subr.bf16.mxu0 %v1337_v56  ;;  %v1296_v36 = vmax.f32 %v1150_v30, 0.0 }
 0x214   : > { %v1299_v35 = vmax.f32 %v1161_v42, 0.0 }
 0x215   : > { %v1297_v37 = vmax.f32 %v1153_v33, 0.0 }
 0x216   : > { %v2193_v38 = vpack.c.bf16 %v1299_v35, %v1298_v34 }
 0x217   : > { %v2195_v39 = vpack.c.bf16 %v1297_v37, %v1296_v36  ;;  %v1804_v40 = vpop.f32.mrb[40].mxu1 }
 0x218   : > { %v1174_v41 = vadd.f32 %v1804_v40, %v2116_v16  ;;  %v1165_v45 = vpop.f32.mrb[41].mxu1 }
 0x219   : > { %v1166_v46 = vadd.f32 %v2116_v16, %v1165_v45  ;;  %v1805_v47 = vpop.f32.mrb[42].mxu1 }
 0x21a   : > { %v1177_v58 = vadd.f32 %v1805_v47, %v2116_v16  ;;  %v1168_v48 = vpop.f32.mrb[43].mxu1  ;;  %1649 = vmatpush3.bf16.xpose.msra.mxu0 %v2138_v57  ;;  %v1302_v29 = vmax.f32 %v1174_v41, 0.0 }
 0x21b   : > { %v1169_v49 = vadd.f32 %v2116_v16, %v1168_v48  ;;  %1650 = vmatprep.subr.bf16.mxu0 %v1338_v10  ;;  %v1300_v51 = vmax.f32 %v1166_v46, 0.0 }
 0x21c   : > { %v1303_v50 = vmax.f32 %v1177_v58, 0.0 }
 0x21d   : > { %v1301_v52 = vmax.f32 %v1169_v49, 0.0 }
 0x21e   : > { %v2202_v53 = vpack.c.bf16 %v1303_v50, %v1302_v29 }
 0x21f   : > { %v2204_v54 = vpack.c.bf16 %v1301_v52, %v1300_v51  ;;  %v1808_v55 = vpop.f32.mrb[44].mxu1 }
 0x220   : > { %v1190_v56 = vadd.f32 %v1808_v55, %v2116_v16  ;;  %v1181_v59 = vpop.f32.mrb[45].mxu1 }
 0x221   : > { %v1182_v60 = vadd.f32 %v2116_v16, %v1181_v59  ;;  %v1809_v61 = vpop.f32.mrb[46].mxu1 }
 0x222   : > { %v1193_v57 = vadd.f32 %v1809_v61, %v2116_v16  ;;  %v1184_v62 = vpop.f32.mrb[47].mxu1  ;;  %1651 = vmatpush3.bf16.xpose.msra.mxu0 %v2148_v8  ;;  %v1306_v0 = vmax.f32 %v1190_v56, 0.0 }
 0x223   : > { %v1185_v63 = vadd.f32 %v2116_v16, %v1184_v62  ;;  %1652 = vmatprep.subr.bf16.mxu0 %v1339_v9  ;;  %v1304_v2 = vmax.f32 %v1182_v60, 0.0 }
 0x224   : > { %v1307_v1 = vmax.f32 %v1193_v57, 0.0 }
 0x225   : > { %v1305_v28 = vmax.f32 %v1185_v63, 0.0 }
 0x226   : > { %v2211_v3 = vpack.c.bf16 %v1307_v1, %v1306_v0 }
 0x227   : > { %v2213_v4 = vpack.c.bf16 %v1305_v28, %v1304_v2  ;;  %v1812_v5 = vpop.f32.mrb[48].mxu1 }
 0x228   : > { %v1206_v6 = vadd.f32 %v1812_v5, %v2116_v16  ;;  %v1197_v10 = vpop.f32.mrb[49].mxu1 }
 0x229   : > { %v1198_v11 = vadd.f32 %v2116_v16, %v1197_v10  ;;  %v1813_v12 = vpop.f32.mrb[50].mxu1 }
 0x22a   : > { %v1209_v8 = vadd.f32 %v1813_v12, %v2116_v16  ;;  %v1200_v13 = vpop.f32.mrb[51].mxu1  ;;  %1653 = vmatpush3.bf16.xpose.msra.mxu0 %v2146_v7  ;;  %v1310_v14 = vmax.f32 %v1206_v6, 0.0 }
 0x22b   : > { %v1201_v9 = vadd.f32 %v2116_v16, %v1200_v13  ;;  %v1308_v18 = vmax.f32 %v1198_v11, 0.0 }
 0x22c   : > { %v1311_v15 = vmax.f32 %v1209_v8, 0.0 }
 0x22d   : > { %v1309_v19 = vmax.f32 %v1201_v9, 0.0 }
 0x22e   : > { %v1349_v43 = vpack.c.bf16 %v1311_v15, %v1310_v14 }
 0x22f   : > { %v1348_v20 = vpack.c.bf16 %v1309_v19, %v1308_v18  ;;  %v1816_v21 = vpop.f32.mrb[52].mxu1 }
 0x230   : > { %v1222_v44 = vadd.f32 %v1816_v21, %v2116_v16  ;;  %v1213_v22 = vpop.f32.mrb[53].mxu1 }
 0x231   : > { %1656 = vmatprep.subr.bf16.mxu1 %v1348_v20  ;;  %v1214_v25 = vadd.f32 %v2116_v16, %v1213_v22  ;;  %v1817_v26 = vpop.f32.mrb[54].mxu1  ;;  %1655 = vmatmul.mubr.bf16.vlgmr.msra.gmra.mrb[64].mxu0 %v2156_v17 }
 0x232   : > { %1657 = vmatpush3.bf16.xpose.msra.mxu1 %v2186_v24  ;;  %v1314_v7 = vmax.f32 %v1222_v44, 0.0  ;;  %v1225_v27 = vadd.f32 %v1817_v26, %v2116_v16  ;;  %v1216_v30 = vpop.f32.mrb[55].mxu1 }
 0x233   : > { %1658 = vmatprep.subr.bf16.mxu1 %v1349_v43  ;;  %v1312_v31 = vmax.f32 %v1214_v25, 0.0  ;;  %v1217_v42 = vadd.f32 %v2116_v16, %v1216_v30 }
 0x234   : > { %v1315_v32 = vmax.f32 %v1225_v27, 0.0 }
 0x235   : > { %v1313_v33 = vmax.f32 %v1217_v42, 0.0 }
 0x236   : > { %v1351_v34 = vpack.c.bf16 %v1315_v32, %v1314_v7 }
 0x237   : > { %v1350_v35 = vpack.c.bf16 %v1313_v33, %v1312_v31  ;;  %v1820_v36 = vpop.f32.mrb[56].mxu1 }
 0x238   : > { %v1238_v37 = vadd.f32 %v1820_v36, %v2116_v16  ;;  %v1229_v40 = vpop.f32.mrb[57].mxu1 }
 0x239   : > { %v1230_v41 = vadd.f32 %v2116_v16, %v1229_v40  ;;  %v1821_v45 = vpop.f32.mrb[58].mxu1 }
 0x23a   : > { %1659 = vmatpush3.bf16.xpose.msra.mxu1 %v2184_v23  ;;  %v1318_v24 = vmax.f32 %v1238_v37, 0.0  ;;  %v1241_v46 = vadd.f32 %v1821_v45, %v2116_v16  ;;  %v1232_v47 = vpop.f32.mrb[59].mxu1 }
 0x23b   : > { %1660 = vmatprep.subr.bf16.mxu1 %v1350_v35  ;;  %v1316_v58 = vmax.f32 %v1230_v41, 0.0  ;;  %v1233_v48 = vadd.f32 %v2116_v16, %v1232_v47 }
 0x23c   : > { %v1319_v49 = vmax.f32 %v1241_v46, 0.0 }
 0x23d   : > { %v1317_v29 = vmax.f32 %v1233_v48, 0.0 }
 0x23e   : > { %v1353_v50 = vpack.c.bf16 %v1319_v49, %v1318_v24 }
 0x23f   : > { %v1352_v51 = vpack.c.bf16 %v1317_v29, %v1316_v58  ;;  %v1824_v52 = vpop.f32.mrb[60].mxu1 }
 0x240   : > { %v1254_v55 = vadd.f32 %v1824_v52, %v2116_v16  ;;  %v1245_v56 = vpop.f32.mrb[61].mxu1 }
 0x241   : > { %v1246_v59 = vadd.f32 %v2116_v16, %v1245_v56  ;;  %v1825_v60 = vpop.f32.mrb[62].mxu1 }
 0x242   : > { %1661 = vmatpush3.bf16.xpose.msra.mxu1 %v2195_v39  ;;  %v1322_v23 = vmax.f32 %v1254_v55, 0.0  ;;  %v1257_v61 = vadd.f32 %v1825_v60, %v2116_v16  ;;  %v1248_v57 = vpop.f32.mrb[63].mxu1 }
 0x243   : > { %1662 = vmatprep.subr.bf16.mxu1 %v1351_v34  ;;  %v1320_v62 = vmax.f32 %v1246_v59, 0.0  ;;  %v1249_v63 = vadd.f32 %v2116_v16, %v1248_v57 }
 0x244   : > { %v1323_v0 = vmax.f32 %v1257_v61, 0.0 }
 0x245   : > { %v1321_v1 = vmax.f32 %v1249_v63, 0.0 }
 0x246   : > { %v1355_v2 = vpack.c.bf16 %v1323_v0, %v1322_v23 }
 0x247   : > { %v1354_v28 = vpack.c.bf16 %v1321_v1, %v1320_v62 }
 0x24a   : > { %1663 = vmatpush3.bf16.xpose.msra.mxu1 %v2193_v38 }
 0x24b   : > { %1664 = vmatprep.subr.bf16.mxu1 %v1352_v51 }
 0x252   : > { %1665 = vmatpush3.bf16.xpose.msra.mxu1 %v2204_v54 }
 0x253   : > { %1666 = vmatprep.subr.bf16.mxu1 %v1353_v50  ;;  %v1361_v16 = vpop.permute.xlu0 %1360 }
 0x25a   : > { %1667 = vmatpush3.bf16.xpose.msra.mxu1 %v2202_v53 }
 0x25b   : > { %1668 = vmatprep.subr.bf16.mxu1 %v1354_v28 }
 0x262   : > { %1669 = vmatpush3.bf16.xpose.msra.mxu1 %v2213_v4 }
 0x263   : > { %1670 = vmatprep.subr.bf16.mxu1 %v1355_v2 }
 0x26a   : > { %1671 = vmatpush3.bf16.xpose.msra.mxu1 %v2211_v3 }
 0x271   : > { %1673 = vmatmul.mubr.bf16.vlgmr.msra.gmra.mrb[64].mxu1 %v2156_v17 }
 0x304   : > { %v1397_v38 = vpop.f32.mrb[64].mxu0 }
 0x305   : > { %v1398_v39 = vadd.f32 %v1397_v38, %v1361_v16  ;;  %v1399_v53 = vpop.f32.mrb[65].mxu0 }
 0x306   : > { %v1400_v54 = vadd.f32 %v1399_v53, %v1361_v16  ;;  %v1401_v4 = vpop.f32.mrb[66].mxu0 }
 0x307   : > { %1445 = vst [vmem:[%s280_s23] sm:$0xff] %v1398_v39  ;;  %v1402_v5 = vpop.f32.mrb[67].mxu0 }
 0x308   : > { %1446 = vst [vmem:[%s280_s23 + $0x8] sm:$0xff] %v1400_v54 }
 0x344   : > { %v1438_v3 = vpop.f32.mrb[64].mxu1 }
 0x345   : > { %v1439_v17 = vadd.f32 %v1438_v3, %v1361_v16  ;;  %v1440_v6 = vpop.f32.mrb[65].mxu1 }
 0x346   : > { %v1441_v10 = vadd.f32 %v1440_v6, %v1361_v16  ;;  %v1442_v11 = vpop.f32.mrb[66].mxu1 }
 0x347   : > { %1447 = vst [vmem:[%s280_s23 + $0x10] sm:$0xff] %v1439_v17  ;;  %v1443_v12 = vpop.f32.mrb[67].mxu1 }
 0x348   : > { %1448 = vst [vmem:[%s280_s23 + $0x18] sm:$0xff] %v1441_v10 }
 0x349 PF: > { %s17_s24 = sadd.s32 1, %s1854_s24  }
 0x34a   : > { %p14_p5 = scmp.ge.s32.totalorder %s17_s24, 4  }
 0x34c   :  { %16 = sbr.rel (!%p14_p5) target bundleno = 1 (0x1), region = 78 }

</bundles_post_ra>
